<compile_context>
chip_gen: v7x
topology: tpu7x:2x2x1
jax: 0.10.0
libtpu: 0.0.40
codegen_flags: <defaults>
</compile_context>

<pallas_src>
import jax
import jax.numpy as jnp
from jax.experimental import pallas as pl
from jax.experimental.pallas import tpu as pltpu

# ---------------- shapes (small, tile-friendly) ----------------
B = 8          # batch
F = 128        # per-channel feature size
H = 128        # autoencoder hidden width
OUT = 128      # graph head output width
N_STREAMS = 2  # number of auto-encoders in the ModuleDict


# ---------------- fused Pallas kernel (single invocation, no grid) ----------
def fused_kernel(x0_ref, x1_ref, w_enc_ref, b_enc_ref, w_dec_ref, b_dec_ref,
                 wg_ref, bg_ref, o_ref):
    """Both streams unrolled in Python: extend_l2 + CDAE + graph head.

    x0_ref, x1_ref: (B, 3F)      f32   per-stream features, channels as lane slices
    w_enc_ref:      (S, 4F, H)   bf16  encoder weights (rows: [l2 | x0 | x1 | x2])
    b_enc_ref:      (S, 1, H)    f32
    w_dec_ref:      (S, H, 4F)   bf16
    b_dec_ref:      (S, 1, 4F)   f32
    wg_ref:         (S, 4F, OUT) bf16  per-stream slice of the graph-head weights
    bg_ref:         (1, OUT)     f32
    o_ref:          (B, OUT)     f32
    """
    x_refs = (x0_ref, x1_ref)
    acc = None
    for s in range(N_STREAMS):              # static unroll
        x = x_refs[s][...]                  # (B, 3F) f32
        c0 = x[:, 0:F]
        c1 = x[:, F:2 * F]
        c2 = x[:, 2 * F:3 * F]
        # extend_l2: per-element L2 norm of the 3 channels.
        l2 = jnp.sqrt(c0 * c0 + c1 * c1 + c2 * c2)           # (B, F) f32

        # Encoder: single dot on the lane-aligned concat [l2 | x0 | x1 | x2].
        enc_in = jnp.concatenate(
            [l2.astype(jnp.bfloat16), x.astype(jnp.bfloat16)], axis=-1)  # (B, 4F)
        h = jnp.dot(enc_in, w_enc_ref[s],
                    preferred_element_type=jnp.float32)       # (B, H) f32
        h = jnp.maximum(h + b_enc_ref[s], 0.0)

        # Decoder + sigmoid (exp + approx reciprocal -> both on EUP).
        z = jnp.dot(h.astype(jnp.bfloat16), w_dec_ref[s],
                    preferred_element_type=jnp.float32)       # (B, 4F) f32
        z = z + b_dec_ref[s]
        y = pl.reciprocal(1.0 + jnp.exp(-z), approx=True)     # sigmoid

        # Graph head: this stream's partial of concat(streams) @ W_graph.
        part = jnp.dot(y.astype(jnp.bfloat16), wg_ref[s],
                       preferred_element_type=jnp.float32)    # (B, OUT) f32
        acc = part if acc is None else acc + part

    o_ref[...] = jnp.maximum(acc + bg_ref[...], 0.0)


# ---------------- pallas_call wrapper ----------------
def fused_forward(x0, x1, w_enc, b_enc, w_dec, b_dec, w_graph, b_graph):
    flops = N_STREAMS * 2 * B * (4 * F * H + H * 4 * F + 4 * F * OUT)
    transcendentals = N_STREAMS * B * (F + 2 * 4 * F)   # sqrt + exp + recip
    bytes_accessed = (
        N_STREAMS * 2 * (4 * F * H + H * 4 * F + 4 * F * OUT)   # bf16 weights
        + N_STREAMS * 4 * (H + 4 * F) + 4 * OUT                 # f32 biases
        + 2 * B * 3 * F * 4 + B * OUT * 4)                      # acts in/out

    vmem = pl.BlockSpec(memory_space=pltpu.MemorySpace.VMEM)
    return pl.pallas_call(
        fused_kernel,
        out_shape=jax.ShapeDtypeStruct((B, OUT), jnp.float32),
        in_specs=[vmem] * 8,
        out_specs=vmem,
        cost_estimate=pl.CostEstimate(
            flops=flops, transcendentals=transcendentals,
            bytes_accessed=bytes_accessed),
    )(x0, x1, w_enc, b_enc, w_dec, b_dec, w_graph, b_graph)


# ---------------- module-level wrapper (glue in plain JAX) ----------------
class DiamondNetCDAEGraphWrapperPallas:
    def __init__(self, key):
        ks = jax.random.split(key, 4 * N_STREAMS + 3)
        scale = 0.05
        w_enc, b_enc, w_dec, b_dec = [], [], [], []
        for s in range(N_STREAMS):
            k0, k1, k2, k3 = ks[4 * s: 4 * s + 4]
            w_enc.append((scale * jax.random.normal(k0, (4 * F, H))
                          ).astype(jnp.bfloat16))
            b_enc.append((scale * jax.random.normal(k1, (1, H))
                          ).astype(jnp.float32))
            w_dec.append((scale * jax.random.normal(k2, (H, 4 * F))
                          ).astype(jnp.bfloat16))
            b_dec.append((scale * jax.random.normal(k3, (1, 4 * F))
                          ).astype(jnp.float32))
        # Stacked per-stream parameters (leading dim = stream).
        self.w_enc = jnp.stack(w_enc)                      # (S, 4F, H)  bf16
        self.b_enc = jnp.stack(b_enc)                      # (S, 1, H)   f32
        self.w_dec = jnp.stack(w_dec)                      # (S, H, 4F)  bf16
        self.b_dec = jnp.stack(b_dec)                      # (S, 1, 4F)  f32

        kg0, kg1, kgb = ks[4 * N_STREAMS:]
        self.w_graph = jnp.stack([
            (scale * jax.random.normal(kg0, (4 * F, OUT))).astype(jnp.bfloat16),
            (scale * jax.random.normal(kg1, (4 * F, OUT))).astype(jnp.bfloat16),
        ])                                                 # (S, 4F, OUT) bf16
        self.b_graph = (scale * jax.random.normal(kgb, (1, OUT))
                        ).astype(jnp.float32)              # (1, OUT) f32

        # process_features: each entry selects one (B, 3, F) tensor from the
        # input list (mirrors the dict-of-callables in the torch module).
        self.process_features = {
            f"stream_{i}": (lambda inp, i=i: inp[i]) for i in range(N_STREAMS)
        }

    def forward(self, inputs):
        # (B, 3, F) -> (B, 3F) is a free contiguous reshape (no transpose).
        xs = [self.process_features[name](inputs).reshape(B, 3 * F)
              for name in sorted(self.process_features)]
        return fused_forward(xs[0], xs[1], self.w_enc, self.b_enc,
                             self.w_dec, self.b_dec,
                             self.w_graph, self.b_graph)


# ---------------- pure-JAX reference for validation ----------------
def reference(inputs, model):
    acc = jnp.zeros((B, OUT), jnp.float32)
    for s in range(N_STREAMS):
        x = inputs[s].reshape(B, 3 * F)
        c0, c1, c2 = x[:, :F], x[:, F:2 * F], x[:, 2 * F:]
        l2 = jnp.sqrt(c0 * c0 + c1 * c1 + c2 * c2)
        enc_in = jnp.concatenate(
            [l2.astype(jnp.bfloat16), x.astype(jnp.bfloat16)], axis=-1)
        h = jnp.dot(enc_in, model.w_enc[s], preferred_element_type=jnp.float32)
        h = jnp.maximum(h + model.b_enc[s], 0.0)
        z = jnp.dot(h.astype(jnp.bfloat16), model.w_dec[s],
                    preferred_element_type=jnp.float32)
        y = jax.nn.sigmoid(z + model.b_dec[s])
        acc = acc + jnp.dot(y.astype(jnp.bfloat16), model.w_graph[s],
                            preferred_element_type=jnp.float32)
    return jnp.maximum(acc + model.b_graph, 0.0)


if __name__ == "__main__":
    key = jax.random.PRNGKey(0)
    k_in0, k_in1, k_params = jax.random.split(key, 3)
    inputs = [
        jax.random.normal(k_in0, (B, 3, F), dtype=jnp.float32),
        jax.random.normal(k_in1, (B, 3, F), dtype=jnp.float32),
    ]

    model = DiamondNetCDAEGraphWrapperPallas(k_params)

    out = model.forward(inputs)
    out = jax.block_until_ready(out)

    ref = jax.block_until_ready(reference(inputs, model))
    assert out.shape == (B, OUT)
    assert jnp.allclose(out, ref, atol=1e-2, rtol=1e-2), "mismatch vs reference"

    print("KERNEL_OK")
</pallas_src>

<mosaic_0001>
module attributes {stable_mosaic.version = 11 : i64} {
  func.func @fused_kernel(%arg0: memref<8x384xf32, #tpu.memory_space<vmem>>, %arg1: memref<8x384xf32, #tpu.memory_space<vmem>>, %arg2: memref<2x512x128xbf16, #tpu.memory_space<vmem>>, %arg3: memref<2x1x128xf32, #tpu.memory_space<vmem>>, %arg4: memref<2x128x512xbf16, #tpu.memory_space<vmem>>, %arg5: memref<2x1x512xf32, #tpu.memory_space<vmem>>, %arg6: memref<2x512x128xbf16, #tpu.memory_space<vmem>>, %arg7: memref<1x128xf32, #tpu.memory_space<vmem>>, %arg8: memref<8x128xf32, #tpu.memory_space<vmem>>) attributes {dimension_semantics = [], scalar_prefetch = 0 : i64, scratch_operands = 0 : i64, tpu.core_type = #tpu.core_type<tc>} {
    %c0 = arith.constant 0 : index
    %c0_0 = arith.constant 0 : index
    %0 = vector.load %arg0[%c0, %c0_0] : memref<8x384xf32, #tpu.memory_space<vmem>>, vector<8x384xf32>
    %1 = vector.extract_strided_slice %0 {offsets = [0, 0], sizes = [8, 128], strides = [1, 1]} : vector<8x384xf32> to vector<8x128xf32>
    %2 = vector.extract_strided_slice %0 {offsets = [0, 128], sizes = [8, 128], strides = [1, 1]} : vector<8x384xf32> to vector<8x128xf32>
    %3 = vector.extract_strided_slice %0 {offsets = [0, 256], sizes = [8, 128], strides = [1, 1]} : vector<8x384xf32> to vector<8x128xf32>
    %4 = arith.mulf %1, %1 : vector<8x128xf32>
    %5 = arith.mulf %2, %2 : vector<8x128xf32>
    %6 = arith.addf %4, %5 : vector<8x128xf32>
    %7 = arith.mulf %3, %3 : vector<8x128xf32>
    %8 = arith.addf %6, %7 : vector<8x128xf32>
    %9 = math.sqrt %8 : vector<8x128xf32>
    %10 = arith.truncf %9 : vector<8x128xf32> to vector<8x128xbf16>
    %11 = arith.truncf %0 : vector<8x384xf32> to vector<8x384xbf16>
    %12 = tpu.concatenate %10, %11 in 1 : vector<8x128xbf16>, vector<8x384xbf16> -> vector<8x512xbf16>
    %c0_1 = arith.constant 0 : index
    %c0_2 = arith.constant 0 : index
    %c0_3 = arith.constant 0 : index
    %13 = vector.load %arg2[%c0_1, %c0_2, %c0_3] : memref<2x512x128xbf16, #tpu.memory_space<vmem>>, vector<1x512x128xbf16>
    %14 = vector.shape_cast %13 : vector<1x512x128xbf16> to vector<512x128xbf16>
    %cst = arith.constant dense<0.000000e+00> : vector<8x128xf32>
    %15 = tpu.matmul %12, %14, %cst {dimension_numbers = #tpu.dot_dimension_numbers<[1], [0], [0], [1], [0, 0, 1, 1], [], []>} : vector<8x512xbf16>, vector<512x128xbf16>, vector<8x128xf32> -> vector<8x128xf32>
    %c0_4 = arith.constant 0 : index
    %c0_5 = arith.constant 0 : index
    %c0_6 = arith.constant 0 : index
    %16 = vector.load %arg3[%c0_4, %c0_5, %c0_6] : memref<2x1x128xf32, #tpu.memory_space<vmem>>, vector<1x1x128xf32>
    %17 = vector.shape_cast %16 : vector<1x1x128xf32> to vector<1x128xf32>
    %18 = vector.broadcast %17 : vector<1x128xf32> to vector<8x128xf32>
    %19 = arith.addf %15, %18 : vector<8x128xf32>
    %cst_7 = arith.constant 0.000000e+00 : f32
    %20 = vector.broadcast %cst_7 : f32 to vector<8x128xf32>
    %21 = arith.maximumf %19, %20 : vector<8x128xf32>
    %22 = arith.truncf %21 : vector<8x128xf32> to vector<8x128xbf16>
    %c0_8 = arith.constant 0 : index
    %c0_9 = arith.constant 0 : index
    %c0_10 = arith.constant 0 : index
    %23 = vector.load %arg4[%c0_8, %c0_9, %c0_10] : memref<2x128x512xbf16, #tpu.memory_space<vmem>>, vector<1x128x512xbf16>
    %24 = vector.shape_cast %23 : vector<1x128x512xbf16> to vector<128x512xbf16>
    %cst_11 = arith.constant dense<0.000000e+00> : vector<8x512xf32>
    %25 = tpu.matmul %22, %24, %cst_11 {dimension_numbers = #tpu.dot_dimension_numbers<[1], [0], [0], [1], [0, 0, 1, 1], [], []>} : vector<8x128xbf16>, vector<128x512xbf16>, vector<8x512xf32> -> vector<8x512xf32>
    %c0_12 = arith.constant 0 : index
    %c0_13 = arith.constant 0 : index
    %c0_14 = arith.constant 0 : index
    %26 = vector.load %arg5[%c0_12, %c0_13, %c0_14] : memref<2x1x512xf32, #tpu.memory_space<vmem>>, vector<1x1x512xf32>
    %27 = vector.shape_cast %26 : vector<1x1x512xf32> to vector<1x512xf32>
    %28 = vector.broadcast %27 : vector<1x512xf32> to vector<8x512xf32>
    %29 = arith.addf %25, %28 : vector<8x512xf32>
    %cst_15 = arith.constant 0.000000e+00 : f32
    %30 = vector.broadcast %cst_15 : f32 to vector<8x512xf32>
    %31 = arith.subf %30, %29 : vector<8x512xf32>
    %32 = math.exp %31 : vector<8x512xf32>
    %cst_16 = arith.constant 1.000000e+00 : f32
    %33 = vector.broadcast %cst_16 : f32 to vector<8x512xf32>
    %34 = arith.addf %33, %32 : vector<8x512xf32>
    %35 = tpu.reciprocal %34 {approx = true} : vector<8x512xf32> -> vector<8x512xf32>
    %36 = arith.truncf %35 : vector<8x512xf32> to vector<8x512xbf16>
    %c0_17 = arith.constant 0 : index
    %c0_18 = arith.constant 0 : index
    %c0_19 = arith.constant 0 : index
    %37 = vector.load %arg6[%c0_17, %c0_18, %c0_19] : memref<2x512x128xbf16, #tpu.memory_space<vmem>>, vector<1x512x128xbf16>
    %38 = vector.shape_cast %37 : vector<1x512x128xbf16> to vector<512x128xbf16>
    %cst_20 = arith.constant dense<0.000000e+00> : vector<8x128xf32>
    %39 = tpu.matmul %36, %38, %cst_20 {dimension_numbers = #tpu.dot_dimension_numbers<[1], [0], [0], [1], [0, 0, 1, 1], [], []>} : vector<8x512xbf16>, vector<512x128xbf16>, vector<8x128xf32> -> vector<8x128xf32>
    %c0_21 = arith.constant 0 : index
    %c0_22 = arith.constant 0 : index
    %40 = vector.load %arg1[%c0_21, %c0_22] : memref<8x384xf32, #tpu.memory_space<vmem>>, vector<8x384xf32>
    %41 = vector.extract_strided_slice %40 {offsets = [0, 0], sizes = [8, 128], strides = [1, 1]} : vector<8x384xf32> to vector<8x128xf32>
    %42 = vector.extract_strided_slice %40 {offsets = [0, 128], sizes = [8, 128], strides = [1, 1]} : vector<8x384xf32> to vector<8x128xf32>
    %43 = vector.extract_strided_slice %40 {offsets = [0, 256], sizes = [8, 128], strides = [1, 1]} : vector<8x384xf32> to vector<8x128xf32>
    %44 = arith.mulf %41, %41 : vector<8x128xf32>
    %45 = arith.mulf %42, %42 : vector<8x128xf32>
    %46 = arith.addf %44, %45 : vector<8x128xf32>
    %47 = arith.mulf %43, %43 : vector<8x128xf32>
    %48 = arith.addf %46, %47 : vector<8x128xf32>
    %49 = math.sqrt %48 : vector<8x128xf32>
    %50 = arith.truncf %49 : vector<8x128xf32> to vector<8x128xbf16>
    %51 = arith.truncf %40 : vector<8x384xf32> to vector<8x384xbf16>
    %52 = tpu.concatenate %50, %51 in 1 : vector<8x128xbf16>, vector<8x384xbf16> -> vector<8x512xbf16>
    %c1 = arith.constant 1 : index
    %c0_23 = arith.constant 0 : index
    %c0_24 = arith.constant 0 : index
    %53 = vector.load %arg2[%c1, %c0_23, %c0_24] : memref<2x512x128xbf16, #tpu.memory_space<vmem>>, vector<1x512x128xbf16>
    %54 = vector.shape_cast %53 : vector<1x512x128xbf16> to vector<512x128xbf16>
    %cst_25 = arith.constant dense<0.000000e+00> : vector<8x128xf32>
    %55 = tpu.matmul %52, %54, %cst_25 {dimension_numbers = #tpu.dot_dimension_numbers<[1], [0], [0], [1], [0, 0, 1, 1], [], []>} : vector<8x512xbf16>, vector<512x128xbf16>, vector<8x128xf32> -> vector<8x128xf32>
    %c1_26 = arith.constant 1 : index
    %c0_27 = arith.constant 0 : index
    %c0_28 = arith.constant 0 : index
    %56 = vector.load %arg3[%c1_26, %c0_27, %c0_28] : memref<2x1x128xf32, #tpu.memory_space<vmem>>, vector<1x1x128xf32>
    %57 = vector.shape_cast %56 : vector<1x1x128xf32> to vector<1x128xf32>
    %58 = vector.broadcast %57 : vector<1x128xf32> to vector<8x128xf32>
    %59 = arith.addf %55, %58 : vector<8x128xf32>
    %cst_29 = arith.constant 0.000000e+00 : f32
    %60 = vector.broadcast %cst_29 : f32 to vector<8x128xf32>
    %61 = arith.maximumf %59, %60 : vector<8x128xf32>
    %62 = arith.truncf %61 : vector<8x128xf32> to vector<8x128xbf16>
    %c1_30 = arith.constant 1 : index
    %c0_31 = arith.constant 0 : index
    %c0_32 = arith.constant 0 : index
    %63 = vector.load %arg4[%c1_30, %c0_31, %c0_32] : memref<2x128x512xbf16, #tpu.memory_space<vmem>>, vector<1x128x512xbf16>
    %64 = vector.shape_cast %63 : vector<1x128x512xbf16> to vector<128x512xbf16>
    %cst_33 = arith.constant dense<0.000000e+00> : vector<8x512xf32>
    %65 = tpu.matmul %62, %64, %cst_33 {dimension_numbers = #tpu.dot_dimension_numbers<[1], [0], [0], [1], [0, 0, 1, 1], [], []>} : vector<8x128xbf16>, vector<128x512xbf16>, vector<8x512xf32> -> vector<8x512xf32>
    %c1_34 = arith.constant 1 : index
    %c0_35 = arith.constant 0 : index
    %c0_36 = arith.constant 0 : index
    %66 = vector.load %arg5[%c1_34, %c0_35, %c0_36] : memref<2x1x512xf32, #tpu.memory_space<vmem>>, vector<1x1x512xf32>
    %67 = vector.shape_cast %66 : vector<1x1x512xf32> to vector<1x512xf32>
    %68 = vector.broadcast %67 : vector<1x512xf32> to vector<8x512xf32>
    %69 = arith.addf %65, %68 : vector<8x512xf32>
    %cst_37 = arith.constant 0.000000e+00 : f32
    %70 = vector.broadcast %cst_37 : f32 to vector<8x512xf32>
    %71 = arith.subf %70, %69 : vector<8x512xf32>
    %72 = math.exp %71 : vector<8x512xf32>
    %cst_38 = arith.constant 1.000000e+00 : f32
    %73 = vector.broadcast %cst_38 : f32 to vector<8x512xf32>
    %74 = arith.addf %73, %72 : vector<8x512xf32>
    %75 = tpu.reciprocal %74 {approx = true} : vector<8x512xf32> -> vector<8x512xf32>
    %76 = arith.truncf %75 : vector<8x512xf32> to vector<8x512xbf16>
    %c1_39 = arith.constant 1 : index
    %c0_40 = arith.constant 0 : index
    %c0_41 = arith.constant 0 : index
    %77 = vector.load %arg6[%c1_39, %c0_40, %c0_41] : memref<2x512x128xbf16, #tpu.memory_space<vmem>>, vector<1x512x128xbf16>
    %78 = vector.shape_cast %77 : vector<1x512x128xbf16> to vector<512x128xbf16>
    %cst_42 = arith.constant dense<0.000000e+00> : vector<8x128xf32>
    %79 = tpu.matmul %76, %78, %cst_42 {dimension_numbers = #tpu.dot_dimension_numbers<[1], [0], [0], [1], [0, 0, 1, 1], [], []>} : vector<8x512xbf16>, vector<512x128xbf16>, vector<8x128xf32> -> vector<8x128xf32>
    %80 = arith.addf %39, %79 : vector<8x128xf32>
    %c0_43 = arith.constant 0 : index
    %c0_44 = arith.constant 0 : index
    %81 = vector.load %arg7[%c0_43, %c0_44] : memref<1x128xf32, #tpu.memory_space<vmem>>, vector<1x128xf32>
    %82 = vector.broadcast %81 : vector<1x128xf32> to vector<8x128xf32>
    %83 = arith.addf %80, %82 : vector<8x128xf32>
    %cst_45 = arith.constant 0.000000e+00 : f32
    %84 = vector.broadcast %cst_45 : f32 to vector<8x128xf32>
    %85 = arith.maximumf %83, %84 : vector<8x128xf32>
    %c0_46 = arith.constant 0 : index
    %c0_47 = arith.constant 0 : index
    %86 = vector.load %arg8[%c0_46, %c0_47] : memref<8x128xf32, #tpu.memory_space<vmem>>, vector<8x128xf32>
    tpu.vector_store %arg8[%c0_46, %c0_47], %85 {strides = array<i32>} : memref<8x128xf32, #tpu.memory_space<vmem>>, vector<8x128xf32>,
    return
  }
}

</mosaic_0001>

<bundles_post_ra>
// kernel: tpu_custom_call.1
= control target key start
LH: loop header
LB: loop body
LE: loop exit
PB: predicated region body
PF: predicated region fallthrough
CT: control target
= control target key end

     0   :  { %13 = vsyncpa [#allocation3], 0  ;;  %s3130_s0 = inlined_call_operand.hbm [shape: f32[8,384], index: 0, kind: input, shape index: {}]   ;;  %s3131_s1 = inlined_call_operand.hbm [shape: f32[8,384], index: 1, kind: input, shape index: {}]   ;;  %s3132_s2 = inlined_call_operand.hbm [shape: bf16[2,512,128], index: 2, kind: input, shape index: {}]   ;;  %s3133_s3 = inlined_call_operand.vmem [shape: f32[2,1,128], index: 3, kind: input, shape index: {}]   ;;  %s3134_s4 = inlined_call_operand.hbm [shape: bf16[2,128,512], index: 4, kind: input, shape index: {}]   ;;  %s3135_s5 = inlined_call_operand.vmem [shape: f32[2,1,512], index: 5, kind: input, shape index: {}]   ;;  %s3136_s6 = inlined_call_operand.hbm [shape: bf16[2,512,128], index: 6, kind: input, shape index: {}]   ;;  %s3137_s7 = inlined_call_operand.vmem [shape: f32[1,128], index: 7, kind: input, shape index: {}]   ;;  %s3138_s8 = inlined_call_operand.hbm [shape: f32[8,128], index: 8, kind: output, shape index: {}]  }
   0x1   :  { %14 = vsyncpa [#allocation6], 0 }
   0x2   :  { %15 = vsyncpa [#allocation9], 0 }
   0x3   :  { %16 = vsyncpa [#allocation4], 0  ;;  %s2951_s27 = smov [#allocation5]   ;;  %s2952_s29 = smov [#allocation8]  }
   0x4   :  { %s33_s28 = sshll.u32 %s2951_s27, 4  ;;  %s56_s30 = sshll.u32 %s2952_s29, 4  ;;  %s34_s28 = int_to_ptr.vmem [resolvable:$true] %s33_s28  ;;  %s3007_s30 = int_to_ptr.vmem [resolvable:$true] %s56_s30 }
   0x5   :  { %s2811_s11 = scalar_lea.hbm %s3131_s1, 384 }
   0x6   :  { %p2812_p0 = scmp.ne.s32.totalorder %s3131_s1, %s2811_s11  ;;  %p2815_p1 = scmp.lt.u32.totalorder %s2811_s11, %s3131_s1 }
   0x8   :  { %p2817_p2 = pnand %p2815_p1, %p2812_p0 }
   0xa   :  { %2820 = shalt.err (!%p2817_p2)
}
   0xb   :  { %s2821_s16 = scalar_lea.vmem %s34_s28, 384  ;;  %p2826_p4 = scmp.lt.s32.totalorder %s34_s28, %s34_s28 }
   0xc   :  { %p2822_p3 = scmp.ne.s32.totalorder %s34_s28, %s2821_s16  ;;  %p2827_p5 = scmp.lt.s32.totalorder %s2821_s16, %s2821_s16 }
   0xe   :  { %p2828_p6 = por %p2827_p5, %p2826_p4 }
  0x10   :  { %p2829_p7 = pnand %p2828_p6, %p2822_p3 }
  0x12   :  { %2832 = shalt.err (!%p2829_p7)
}
  0x13   :  { %36 = dma.hbm_to_vmem [thread:$0]  %s3131_s1, 384, %s34_s28, [#allocation6]  }
  0x14   :  { %s2833_s21 = scalar_lea.hbm %s3134_s4, 8192 }
  0x15   :  { %p2834_p8 = scmp.ne.s32.totalorder %s3134_s4, %s2833_s21  ;;  %p2837_p9 = scmp.lt.u32.totalorder %s2833_s21, %s3134_s4 }
  0x17   :  { %p2839_p10 = pnand %p2837_p9, %p2834_p8 }
  0x19   :  { %2842 = shalt.err (!%p2839_p10)
}
  0x1a   :  { %s2843_s26 = scalar_lea.vmem %s3007_s30, 8192  ;;  %p2848_p12 = scmp.lt.s32.totalorder %s3007_s30, %s3007_s30 }
  0x1b   :  { %p2844_p11 = scmp.ne.s32.totalorder %s3007_s30, %s2843_s26  ;;  %p2849_p13 = scmp.lt.s32.totalorder %s2843_s26, %s2843_s26 }
  0x1d   :  { %p2850_p0 = por %p2849_p13, %p2848_p12 }
  0x1f   :  { %p2851_p1 = pnand %p2850_p0, %p2844_p11 }
  0x21   :  { %2854 = shalt.err (!%p2851_p1)
}
  0x22   :  { %s2953_s1 = smov 256   ;;  %s2954_s27 = smov 16  }
  0x23   :  { %62 = dma.hbm_to_vmem [thread:$0]  %s3134_s4, 8192, %s3007_s30, [#allocation9], %s2953_s1, %s2953_s1, %s2954_s27  }
  0x24   :  { %s2955_s9 = smov [#allocation2]   ;;  %s2956_s11 = smov [#allocation7]  }
  0x25   :  { %s23_s10 = sshll.u32 %s2955_s9, 4  ;;  %s42_s12 = sshll.u32 %s2956_s11, 4  ;;  %s24_s10 = int_to_ptr.vmem [resolvable:$true] %s23_s10  ;;  %s3038_s12 = int_to_ptr.vmem [resolvable:$true] %s42_s12 }
  0x26   :  { %s2855_s15 = scalar_lea.hbm %s3130_s0, 384 }
  0x27   :  { %p2856_p2 = scmp.ne.s32.totalorder %s3130_s0, %s2855_s15  ;;  %p2859_p3 = scmp.lt.u32.totalorder %s2855_s15, %s3130_s0 }
  0x29   :  { %p2861_p4 = pnand %p2859_p3, %p2856_p2 }
  0x2b   :  { %2864 = shalt.err (!%p2861_p4)
}
  0x2c   :  { %s2865_s4 = scalar_lea.vmem %s24_s10, 384  ;;  %p2870_p6 = scmp.lt.s32.totalorder %s24_s10, %s24_s10 }
  0x2d   :  { %p2866_p5 = scmp.ne.s32.totalorder %s24_s10, %s2865_s4  ;;  %p2871_p7 = scmp.lt.s32.totalorder %s2865_s4, %s2865_s4 }
  0x2f   :  { %p2872_p8 = por %p2871_p7, %p2870_p6 }
  0x31   :  { %p2873_p9 = pnand %p2872_p8, %p2866_p5 }
  0x33   :  { %2876 = shalt.err (!%p2873_p9)
}
  0x34   :  { %26 = dma.hbm_to_vmem [thread:$0]  %s3130_s0, 384, %s24_s10, [#allocation3]  }
  0x35   :  { %s2877_s23 = scalar_lea.hbm %s3132_s2, 8192 }
  0x36   :  { %p2878_p10 = scmp.ne.s32.totalorder %s3132_s2, %s2877_s23  ;;  %p2881_p11 = scmp.lt.u32.totalorder %s2877_s23, %s3132_s2 }
  0x38   :  { %p2883_p12 = pnand %p2881_p11, %p2878_p10 }
  0x3a   :  { %2886 = shalt.err (!%p2883_p12)
}
  0x3b   :  { %s2887_s27 = scalar_lea.vmem %s3038_s12, 8192  ;;  %p2892_p0 = scmp.lt.s32.totalorder %s3038_s12, %s3038_s12 }
  0x3c   :  { %p2888_p13 = scmp.ne.s32.totalorder %s3038_s12, %s2887_s27  ;;  %p2893_p1 = scmp.lt.s32.totalorder %s2887_s27, %s2887_s27 }
  0x3e   :  { %p2894_p2 = por %p2893_p1, %p2892_p0 }
  0x40   :  { %p2895_p3 = pnand %p2894_p2, %p2888_p13 }
  0x42   :  { %2898 = shalt.err (!%p2895_p3)
}
  0x43   :  { %s2957_s0 = smov 64   ;;  %s2958_s28 = smov 4  }
  0x44   :  { %48 = dma.hbm_to_vmem [thread:$0]  %s3132_s2, 8192, %s3038_s12, [#allocation6], %s2957_s0, %s2957_s0, %s2958_s28  }
  0x45   :  { %s2959_s10 = smov [#allocation10]   ;;  %s2899_s15 = scalar_lea.hbm %s3136_s6, 8192 }
  0x46   :  { %s70_s11 = sshll.u32 %s2959_s10, 4  ;;  %p2900_p4 = scmp.ne.s32.totalorder %s3136_s6, %s2899_s15  ;;  %s71_s11 = int_to_ptr.vmem [resolvable:$true] %s70_s11 }
  0x47   :  { %p2903_p5 = scmp.lt.u32.totalorder %s2899_s15, %s3136_s6 }
  0x49   :  { %p2905_p6 = pnand %p2903_p5, %p2900_p4 }
  0x4b   :  { %2908 = shalt.err (!%p2905_p6)
}
  0x4c   :  { %s2909_s4 = scalar_lea.vmem %s71_s11, 8192  ;;  %p2914_p8 = scmp.lt.s32.totalorder %s71_s11, %s71_s11 }
  0x4d   :  { %p2910_p7 = scmp.ne.s32.totalorder %s71_s11, %s2909_s4  ;;  %p2915_p9 = scmp.lt.s32.totalorder %s2909_s4, %s2909_s4 }
  0x4f   :  { %p2916_p10 = por %p2915_p9, %p2914_p8 }
  0x51   :  { %p2917_p11 = pnand %p2916_p10, %p2910_p7 }
  0x53   :  { %2920 = shalt.err (!%p2917_p11)
}
  0x54   :  { %76 = dma.hbm_to_vmem [thread:$0]  %s3136_s6, 8192, %s71_s11, [#allocation9], %s2957_s0, %s2957_s0, %s2958_s28  }
  0x55   :  { %2943 = dma.done.wait [#allocation3], 384  }
  0x56   :  { %2944 = vsyncadd [#allocation3], 4294966912 }
  0x57   :  { %2945 = dma.done.wait [#allocation6], 8576  }
  0x58   :  { %2946 = vsyncadd [#allocation6], 4294958720 }
  0x59   :  { %2947 = dma.done.wait [#allocation9], 16384  }
  0x5a   :  { %2948 = vsyncadd [#allocation9], 4294950912  ;;  %v2551_v0 = vld [vmem:[#allocation7 + $0x40] sm:$0xff]   ;;  %v2555_v4 = vld [vmem:[#allocation7 + $0x48] sm:$0xff]   ;;  %s2961_s26 = smov [#allocation11]  }
  0x5b   :  { %v2552_v1 = vld [vmem:[#allocation7 + $0xc0] sm:$0xff]   ;;  %2364 = vmatprep.subr.bf16.mxu0 %v2551_v0  ;;  %v2556_v5 = vld [vmem:[#allocation7 + $0xc8] sm:$0xff]   ;;  %v2559_v8 = vld [vmem:[#allocation7 + $0x50] sm:$0xff]   ;;  %s2156_s1 = sshll.u32 %s2961_s26, 4  ;;  %s2157_s1 = int_to_ptr.vmem [resolvable:$true] %s2156_s1 }
  0x5c   :  { %v2553_v2 = vld [vmem:[#allocation7] sm:$0xff]   ;;  %2386 = vmatprep.subr.bf16.mxu1 %v2552_v1  ;;  %v2557_v6 = vld [vmem:[#allocation7 + $0x8] sm:$0xff]   ;;  %v2560_v9 = vld [vmem:[#allocation7 + $0xd0] sm:$0xff]   ;;  %s2921_s27 = scalar_lea.vmem %s2157_s1, 128  ;;  %p2926_p13 = scmp.lt.s32.totalorder %s2157_s1, %s2157_s1 }
  0x5d   :  { %v2554_v3 = vld [vmem:[#allocation7 + $0x80] sm:$0xff]   ;;  %2365 = vmatpush3.bf16.msra.mxu0 %v2553_v2  ;;  %v2558_v7 = vld [vmem:[#allocation7 + $0x88] sm:$0xff]   ;;  %v2561_v10 = vld [vmem:[#allocation7 + $0x10] sm:$0xff]   ;;  %p2922_p12 = scmp.ne.s32.totalorder %s2157_s1, %s2921_s27  ;;  %p2927_p0 = scmp.lt.s32.totalorder %s2921_s27, %s2921_s27 }
  0x5e   :  { %2387 = vmatpush3.bf16.msra.mxu1 %v2554_v3  ;;  %2366 = vmatprep.subr.bf16.mxu0 %v2555_v4  ;;  %v2562_v11 = vld [vmem:[#allocation7 + $0x90] sm:$0xff]   ;;  %v2563_v12 = vld [vmem:[#allocation7 + $0x58] sm:$0xff]   ;;  %v2567_v16 = vld [vmem:[#allocation7 + $0x60] sm:$0xff]  }
  0x5f   :  { %2388 = vmatprep.subr.bf16.mxu1 %v2556_v5  ;;  %v2564_v13 = vld [vmem:[#allocation7 + $0xd8] sm:$0xff]   ;;  %v2568_v17 = vld [vmem:[#allocation7 + $0xe0] sm:$0xff]   ;;  %v2571_v20 = vld [vmem:[#allocation7 + $0x68] sm:$0xff]   ;;  %p2928_p1 = por %p2927_p0, %p2926_p13 }
  0x60   :  { %v2565_v14 = vld [vmem:[#allocation7 + $0x18] sm:$0xff]   ;;  %v2569_v18 = vld [vmem:[#allocation7 + $0x20] sm:$0xff]   ;;  %v2572_v21 = vld [vmem:[#allocation7 + $0xe8] sm:$0xff]  }
  0x61   :  { %2367 = vmatpush3.bf16.msra.mxu0 %v2557_v6  ;;  %v2566_v15 = vld [vmem:[#allocation7 + $0x98] sm:$0xff]   ;;  %v2570_v19 = vld [vmem:[#allocation7 + $0xa0] sm:$0xff]   ;;  %v2573_v22 = vld [vmem:[#allocation7 + $0x28] sm:$0xff]   ;;  %p2929_p2 = pnand %p2928_p1, %p2922_p12 }
  0x62   :  { %2389 = vmatpush3.bf16.msra.mxu1 %v2558_v7  ;;  %2368 = vmatprep.subr.bf16.mxu0 %v2559_v8  ;;  %v2574_v23 = vld [vmem:[#allocation7 + $0xa8] sm:$0xff]   ;;  %v2575_v24 = vld [vmem:[#allocation7 + $0x70] sm:$0xff]   ;;  %v2579_v28 = vld [vmem:[#allocation7 + $0x78] sm:$0xff]  }
  0x63   :  { %2390 = vmatprep.subr.bf16.mxu1 %v2560_v9  ;;  %v2576_v25 = vld [vmem:[#allocation7 + $0xf0] sm:$0xff]   ;;  %v2580_v29 = vld [vmem:[#allocation7 + $0xf8] sm:$0xff]   ;;  %v97_v34 = vld [vmem:[#allocation2 + $0x10] sm:$0xff] }
  0x64   :  { %v2577_v26 = vld [vmem:[#allocation7 + $0x30] sm:$0xff]   ;;  %v2581_v30 = vld [vmem:[#allocation7 + $0x38] sm:$0xff]   ;;  %v101_v38 = vmul.f32 %v97_v34, %v97_v34  ;;  %v113_v39 = vpack.c.bf16 %v97_v34, %v97_v34 }
  0x65   :  { %2369 = vmatpush3.bf16.msra.mxu0 %v2561_v10  ;;  %v2578_v27 = vld [vmem:[#allocation7 + $0xb0] sm:$0xff]   ;;  %v2582_v31 = vld [vmem:[#allocation7 + $0xb8] sm:$0xff]  }
  0x66   :  { %2391 = vmatpush3.bf16.msra.mxu1 %v2562_v11  ;;  %2370 = vmatprep.subr.bf16.mxu0 %v2563_v12  ;;  %v95_v32 = vld [vmem:[#allocation2] sm:$0xff]  ;;  %v96_v33 = vld [vmem:[#allocation2 + $0x8] sm:$0xff] }
  0x67   :  { %2392 = vmatprep.subr.bf16.mxu1 %v2564_v13  ;;  %v98_v35 = vmul.f32 %v95_v32, %v95_v32  ;;  %v99_v36 = vmul.f32 %v96_v33, %v96_v33  ;;  %v111_v37 = vpack.c.bf16 %v95_v32, %v95_v32  ;;  %v112_v40 = vpack.c.bf16 %v96_v33, %v96_v33  ;;  %v2585_v41 = vld [vmem:[#allocation8 + $0x4] ss:$16 sps:$4 sm:$0xff]   ;;  %v2586_v43 = vld [vmem:[#allocation8 + $0x8] ss:$16 sps:$4 sm:$0xff]   ;;  %v2588_v44 = vld [vmem:[#allocation8 + $0xc] ss:$16 sps:$4 sm:$0xff]  }
  0x68   :  { %449 = vmatprep.mubr.bf16.mxu1 %v113_v39  ;;  %v2592_v46 = vld [vmem:[#allocation8 + $0x28] ss:$16 sps:$4 sm:$0xff]   ;;  %v2594_v47 = vld [vmem:[#allocation8 + $0x2c] ss:$16 sps:$4 sm:$0xff]   ;;  %v2583_v58 = vld [vmem:[#allocation8] ss:$16 sps:$4 sm:$0xff]  }
  0x69   :  { %2371 = vmatpush3.bf16.msra.mxu0 %v2565_v14  ;;  %v100_v42 = vadd.f32 %v99_v36, %v98_v35  ;;  %409 = vmatprep.mubr.bf16.mxu0 %v111_v37  ;;  %v2600_v48 = vld [vmem:[#allocation8 + $0x4c] ss:$16 sps:$4 sm:$0xff]   ;;  %v2598_v49 = vld [vmem:[#allocation8 + $0x48] ss:$16 sps:$4 sm:$0xff]   ;;  %v2591_v60 = vld [vmem:[#allocation8 + $0x24] ss:$16 sps:$4 sm:$0xff]  }
  0x6a   :  { %2393 = vmatpush3.bf16.msra.mxu1 %v2566_v15  ;;  %2372 = vmatprep.subr.bf16.mxu0 %v2567_v16  ;;  %v2606_v50 = vld [vmem:[#allocation8 + $0x6c] ss:$16 sps:$4 sm:$0xff]   ;;  %v2604_v51 = vld [vmem:[#allocation8 + $0x68] ss:$16 sps:$4 sm:$0xff]   ;;  %v2589_v0 = vld [vmem:[#allocation8 + $0x20] ss:$16 sps:$4 sm:$0xff]  }
  0x6b   :  { %2394 = vmatprep.subr.bf16.mxu1 %v2568_v17  ;;  %v102_v45 = vadd.f32 %v101_v38, %v100_v42  ;;  %v2612_v52 = vld [vmem:[#allocation8 + $0x8c] ss:$16 sps:$4 sm:$0xff]   ;;  %v2610_v53 = vld [vmem:[#allocation8 + $0x88] ss:$16 sps:$4 sm:$0xff]   ;;  %v2597_v1 = vld [vmem:[#allocation8 + $0x44] ss:$16 sps:$4 sm:$0xff]  }
  0x6c   :  { %v2618_v56 = vld [vmem:[#allocation8 + $0xac] ss:$16 sps:$4 sm:$0xff]   ;;  %v2616_v61 = vld [vmem:[#allocation8 + $0xa8] ss:$16 sps:$4 sm:$0xff]   ;;  %v2595_v2 = vld [vmem:[#allocation8 + $0x40] ss:$16 sps:$4 sm:$0xff]  }
  0x6d   :  { %2373 = vmatpush3.bf16.msra.mxu0 %v2569_v18  ;;  %2775 = vrsqrt.f32 %v102_v45  ;;  %vm105_vm0 = vcmp.eq.f32.partialorder %v102_v45, inf  ;;  %v108_v55 = vand.u32 2147483648, %v102_v45  ;;  %vm107_vm1 = vcmp.eq.f32.partialorder %v102_v45, 0.0  ;;  %v2603_v3 = vld [vmem:[#allocation8 + $0x64] ss:$16 sps:$4 sm:$0xff]   ;;  %v845_v37 = vld [vmem:[#allocation5 + $0x10] sm:$0xff] }
  0x6e   :  { %2395 = vmatpush3.bf16.msra.mxu1 %v2570_v19  ;;  %2374 = vmatprep.subr.bf16.mxu0 %v2571_v20  ;;  %v2601_v4 = vld [vmem:[#allocation8 + $0x60] ss:$16 sps:$4 sm:$0xff]   ;;  %v2609_v5 = vld [vmem:[#allocation8 + $0x84] ss:$16 sps:$4 sm:$0xff]   ;;  %v2624_v10 = vld [vmem:[#allocation8 + $0xcc] ss:$16 sps:$4 sm:$0xff]   ;;  %v849_v42 = vmul.f32 %v845_v37, %v845_v37 }
  0x6f   :  { %2396 = vmatprep.subr.bf16.mxu1 %v2572_v21  ;;  %v2607_v6 = vld [vmem:[#allocation8 + $0x80] ss:$16 sps:$4 sm:$0xff]   ;;  %v2615_v7 = vld [vmem:[#allocation8 + $0xa4] ss:$16 sps:$4 sm:$0xff]   ;;  %v2622_v12 = vld [vmem:[#allocation8 + $0xc8] ss:$16 sps:$4 sm:$0xff]  }
  0x70   :  { %v2613_v8 = vld [vmem:[#allocation8 + $0xa0] ss:$16 sps:$4 sm:$0xff]   ;;  %v2621_v9 = vld [vmem:[#allocation8 + $0xc4] ss:$16 sps:$4 sm:$0xff]   ;;  %v2630_v14 = vld [vmem:[#allocation8 + $0xec] ss:$16 sps:$4 sm:$0xff]  }
  0x71   :  { %2375 = vmatpush3.bf16.msra.mxu0 %v2573_v22  ;;  %v2619_v11 = vld [vmem:[#allocation8 + $0xc0] ss:$16 sps:$4 sm:$0xff]   ;;  %v2627_v13 = vld [vmem:[#allocation8 + $0xe4] ss:$16 sps:$4 sm:$0xff]   ;;  %v2628_v16 = vld [vmem:[#allocation8 + $0xe8] ss:$16 sps:$4 sm:$0xff]  }
  0x72   :  { %2397 = vmatpush3.bf16.msra.mxu1 %v2574_v23  ;;  %2376 = vmatprep.subr.bf16.mxu0 %v2575_v24  ;;  %v2625_v15 = vld [vmem:[#allocation8 + $0xe0] ss:$16 sps:$4 sm:$0xff]   ;;  %v2960_v19 = vmov 0  }
  0x73   :  { %2398 = vmatprep.subr.bf16.mxu1 %v2576_v25  ;;  %v2631_v17 = vld [vmem:[#allocation7 + $0x140] sm:$0xff]  }
  0x74   :  { %v2632_v18 = vld [vmem:[#allocation7 + $0x1c0] sm:$0xff]  }
  0x75   :  { %2377 = vmatpush3.bf16.msra.mxu0 %v2577_v26  ;;  %v2167_v26 = vld [vmem:[%s3133_s3] ss:$0 sm:$0xff]  ;;  %v2633_v39 = vld [vmem:[#allocation7 + $0x100] sm:$0xff]  }
  0x76   :  { %2399 = vmatpush3.bf16.msra.mxu1 %v2578_v27  ;;  %2378 = vmatprep.subr.bf16.mxu0 %v2579_v28 }
  0x77   :  { %2400 = vmatprep.subr.bf16.mxu1 %v2580_v29  ;;  %v2776_v54 = vpop.eup %2775 }
  0x78   :  { %v104_v57 = vmul.f32 %v2776_v54, %v102_v45  ;;  %v2642_v54 = vld [vmem:[#allocation7 + $0x190] sm:$0xff]  }
  0x79   :  { %2379 = vmatpush3.bf16.msra.mxu0 %v2581_v30  ;;  %v843_v30 = vld [vmem:[#allocation5] sm:$0xff] }
  0x7a   :  { %2401 = vmatpush3.bf16.msra.mxu1 %v2582_v31  ;;  %673 = vmatprep.subr.bf16.mxu0 %v2585_v41  ;;  %v106_v59 = vsel %vm105_vm0, %v102_v45, %v104_v57  ;;  %v3086_v31 = vld [vmem:[#allocation5 + $0x8] sm:$0xff]  ;;  %v846_v34 = vmul.f32 %v843_v30, %v843_v30  ;;  %v2636_v45 = vld [vmem:[#allocation7 + $0x1c8] sm:$0xff]   ;;  %v2645_v57 = vld [vmem:[#allocation7 + $0x118] sm:$0xff]  }
  0x7b   :  { %714 = vmatprep.subr.bf16.mxu1 %v2588_v44  ;;  %v109_v62 = vsel %vm107_vm1, %v108_v55, %v106_v59  ;;  %v847_v35 = vmul.f32 %v3086_v31, %v3086_v31  ;;  %v2635_v44 = vld [vmem:[#allocation7 + $0x148] sm:$0xff]   ;;  %v2643_v55 = vld [vmem:[#allocation7 + $0x158] sm:$0xff]   ;;  %v2647_v59 = vld [vmem:[#allocation7 + $0x160] sm:$0xff]  }
  0x7c   :  { %v110_v63 = vpack.c.bf16 %v109_v62, %v109_v62  ;;  %v2650_v62 = vld [vmem:[#allocation7 + $0x1a0] sm:$0xff]  }
  0x7d   :  { %450 = vmatmul.mubr.bf16.vlgmr.msra.gmra.mrb[0].mxu1 %v112_v40  ;;  %v2634_v40 = vld [vmem:[#allocation7 + $0x180] sm:$0xff]   ;;  %v848_v41 = vadd.f32 %v847_v35, %v846_v34  ;;  %v2692_v35 = vld [vmem:[#allocation8 + $0x18c] ss:$16 sps:$4 sm:$0xff]  }
  0x7e   :  { %715 = vmatpush1.bf16.msra.mxu1 %v2586_v43  ;;  %410 = vmatmul.mubr.bf16.vlgmr.msra.gmra.mrb[0].mxu0 %v110_v63  ;;  %v2651_v63 = vld [vmem:[#allocation7 + $0x168] sm:$0xff]   ;;  %v2689_v34 = vld [vmem:[#allocation8 + $0x184] ss:$16 sps:$4 sm:$0xff]  }
  0x7f   :  { %716 = vmatprep.subr.bf16.mxu1 %v2594_v47  ;;  %674 = vmatpush1.bf16.msra.mxu0 %v2583_v58  ;;  %v861_v47 = vpack.c.bf16 %v845_v37, %v845_v37  ;;  %v2646_v58 = vld [vmem:[#allocation7 + $0x198] sm:$0xff]  }
  0x80   :  { %675 = vmatprep.subr.bf16.mxu0 %v2591_v60  ;;  %705 = vmatprep.mubr.bf16.mxu0 %v2960_v19  ;;  %v2648_v60 = vld [vmem:[#allocation7 + $0x1e0] sm:$0xff]   ;;  %v2690_v37 = vld [vmem:[#allocation8 + $0x188] ss:$16 sps:$4 sm:$0xff]  }
  0x81   :  { %746 = vmatprep.mubr.bf16.mxu1 %v2960_v19 }
  0x82   :  { %717 = vmatpush1.bf16.msra.mxu1 %v2592_v46  ;;  %v859_v46 = vpack.c.bf16 %v843_v30, %v843_v30  ;;  %v2681_v30 = vld [vmem:[#allocation8 + $0x160] ss:$16 sps:$4 sm:$0xff]  }
  0x83   :  { %718 = vmatprep.subr.bf16.mxu1 %v2600_v48  ;;  %676 = vmatpush1.bf16.msra.mxu0 %v2589_v0  ;;  %v2637_v48 = vld [vmem:[#allocation7 + $0x108] sm:$0xff]  }
  0x84   :  { %677 = vmatprep.subr.bf16.mxu0 %v2597_v1  ;;  %v2652_v0 = vld [vmem:[#allocation7 + $0x1e8] sm:$0xff]  }
  0x86   :  { %719 = vmatpush1.bf16.msra.mxu1 %v2598_v49  ;;  %v2638_v49 = vld [vmem:[#allocation7 + $0x188] sm:$0xff]  }
  0x87   :  { %720 = vmatprep.subr.bf16.mxu1 %v2606_v50  ;;  %678 = vmatpush1.bf16.msra.mxu0 %v2595_v2  ;;  %v850_v50 = vadd.f32 %v849_v42, %v848_v41  ;;  %v2653_v2 = vld [vmem:[#allocation7 + $0x128] sm:$0xff]   ;;  %v2701_v42 = vld [vmem:[#allocation8 + $0x1c4] ss:$16 sps:$4 sm:$0xff]  }
  0x88   :  { %679 = vmatprep.subr.bf16.mxu0 %v2603_v3  ;;  %v2654_v3 = vld [vmem:[#allocation7 + $0x1a8] sm:$0xff]  }
  0x89   :  { %2777 = vrsqrt.f32 %v850_v50  ;;  %vm853_vm2 = vcmp.eq.f32.partialorder %v850_v50, inf  ;;  %vm855_vm3 = vcmp.eq.f32.partialorder %v850_v50, 0.0  ;;  %v2696_v41 = vld [vmem:[#allocation8 + $0x1a8] ss:$16 sps:$4 sm:$0xff]  }
  0x8a   :  { %721 = vmatpush1.bf16.msra.mxu1 %v2604_v51  ;;  %v2639_v51 = vld [vmem:[#allocation7 + $0x150] sm:$0xff]  }
  0x8b   :  { %722 = vmatprep.subr.bf16.mxu1 %v2612_v52  ;;  %680 = vmatpush1.bf16.msra.mxu0 %v2601_v4  ;;  %v2640_v52 = vld [vmem:[#allocation7 + $0x1d0] sm:$0xff]  }
  0x8c   :  { %681 = vmatprep.subr.bf16.mxu0 %v2609_v5  ;;  %v2655_v4 = vld [vmem:[#allocation7 + $0x170] sm:$0xff]  }
  0x8d   :  { %v2656_v5 = vld [vmem:[#allocation7 + $0x1f0] sm:$0xff]  }
  0x8e   :  { %723 = vmatpush1.bf16.msra.mxu1 %v2610_v53  ;;  %v2641_v53 = vld [vmem:[#allocation7 + $0x110] sm:$0xff]  }
  0x8f   :  { %724 = vmatprep.subr.bf16.mxu1 %v2618_v56  ;;  %682 = vmatpush1.bf16.msra.mxu0 %v2607_v6  ;;  %v2644_v56 = vld [vmem:[#allocation7 + $0x1d8] sm:$0xff]  }
  0x90   :  { %683 = vmatprep.subr.bf16.mxu0 %v2615_v7  ;;  %v2657_v7 = vld [vmem:[#allocation7 + $0x130] sm:$0xff]  }
  0x92   :  { %725 = vmatpush1.bf16.msra.mxu1 %v2616_v61  ;;  %v2649_v61 = vld [vmem:[#allocation7 + $0x120] sm:$0xff]  }
  0x93   :  { %684 = vmatpush1.bf16.msra.mxu0 %v2613_v8  ;;  %726 = vmatprep.subr.bf16.mxu1 %v2624_v10  ;;  %v2778_v1 = vpop.eup %2777  ;;  %v2658_v8 = vld [vmem:[#allocation7 + $0x1b0] sm:$0xff]   ;;  %v2659_v10 = vld [vmem:[#allocation7 + $0x178] sm:$0xff]  }
  0x94   :  { %685 = vmatprep.subr.bf16.mxu0 %v2621_v9  ;;  %v852_v6 = vmul.f32 %v2778_v1, %v850_v50  ;;  %v856_v9 = vand.u32 2147483648, %v850_v50 }
  0x96   :  { %727 = vmatpush1.bf16.msra.mxu1 %v2622_v12  ;;  %v854_v12 = vsel %vm853_vm2, %v850_v50, %v852_v6 }
  0x97   :  { %686 = vmatpush1.bf16.msra.mxu0 %v2619_v11  ;;  %728 = vmatprep.subr.bf16.mxu1 %v2630_v14  ;;  %v2660_v11 = vld [vmem:[#allocation7 + $0x1f8] sm:$0xff]  }
  0x98   :  { %687 = vmatprep.subr.bf16.mxu0 %v2627_v13  ;;  %v2661_v13 = vld [vmem:[#allocation7 + $0x138] sm:$0xff]  }
  0x99   :  { %v2662_v14 = vld [vmem:[#allocation7 + $0x1b8] sm:$0xff]  }
  0x9a   :  { %729 = vmatpush1.bf16.msra.mxu1 %v2628_v16 }
  0x9b   :  { %688 = vmatpush1.bf16.msra.mxu0 %v2625_v15  ;;  %2430 = vmatprep.subr.bf16.mxu1 %v2632_v18  ;;  %v857_v15 = vsel %vm855_vm3, %v856_v9, %v854_v12  ;;  %v2665_v18 = vld [vmem:[#allocation8 + $0x104] ss:$16 sps:$4 sm:$0xff]  }
  0x9c   :  { %2408 = vmatprep.subr.bf16.mxu0 %v2631_v17  ;;  %v858_v16 = vpack.c.bf16 %v857_v15, %v857_v15  ;;  %v860_v17 = vpack.c.bf16 %v3086_v31, %v3086_v31  ;;  %v2683_v31 = vld [vmem:[#allocation8 + $0x164] ss:$16 sps:$4 sm:$0xff]   ;;  %v2717_v15 = vld [vmem:[#allocation10 + $0x108] sm:$0xff]  }
  0x9d   :  { %v2711_v9 = vld [vmem:[#allocation10 + $0x140] sm:$0xff]  }
  0x9e   :  { %v2714_v12 = vld [vmem:[#allocation10 + $0x180] sm:$0xff]  }
 0x150   :  { %v2402_v20 = vpop.f32.mrb[0].mxu1 }
 0x151   :  { %v2403_v21 = vpop.f32.mrb[1].mxu1  ;;  %v2380_v25 = vpop.f32.mrb[0].mxu0 }
 0x152   :  { %v2404_v22 = vadd.f32 %v2403_v21, %v2402_v20  ;;  %v2405_v23 = vpop.f32.mrb[2].mxu1  ;;  %v2381_v27 = vpop.f32.mrb[1].mxu0  ;;  %v2668_v20 = vld [vmem:[#allocation8 + $0x10c] ss:$16 sps:$4 sm:$0xff]   ;;  %v2663_v21 = vld [vmem:[#allocation8 + $0x100] ss:$16 sps:$4 sm:$0xff]  }
 0x153   :  { %v2406_v24 = vpop.f32.mrb[3].mxu1  ;;  %v2382_v28 = vadd.f32 %v2381_v27, %v2380_v25  ;;  %v2383_v29 = vpop.f32.mrb[2].mxu0  ;;  %v2671_v23 = vld [vmem:[#allocation8 + $0x124] ss:$16 sps:$4 sm:$0xff]   ;;  %v2669_v25 = vld [vmem:[#allocation8 + $0x120] ss:$16 sps:$4 sm:$0xff]  }
 0x154   :  { %v2384_v32 = vpop.f32.mrb[3].mxu0  ;;  %v2674_v24 = vld [vmem:[#allocation8 + $0x12c] ss:$16 sps:$4 sm:$0xff]   ;;  %v2677_v27 = vld [vmem:[#allocation8 + $0x144] ss:$16 sps:$4 sm:$0xff]  }
 0x155   :  { %v412_v33 = vadd.f32 %v2382_v28, %v2167_v26  ;;  %v2672_v26 = vld [vmem:[#allocation8 + $0x128] ss:$16 sps:$4 sm:$0xff]   ;;  %v2680_v28 = vld [vmem:[#allocation8 + $0x14c] ss:$16 sps:$4 sm:$0xff]   ;;  %v2675_v29 = vld [vmem:[#allocation8 + $0x140] ss:$16 sps:$4 sm:$0xff]  }
 0x156   :  { %v2684_v32 = vld [vmem:[#allocation8 + $0x168] ss:$16 sps:$4 sm:$0xff]  }
 0x157   :  { %v452_v36 = vadd.f32 %v2404_v22, %v412_v33  ;;  %v2666_v22 = vld [vmem:[#allocation8 + $0x108] ss:$16 sps:$4 sm:$0xff]   ;;  %v2686_v33 = vld [vmem:[#allocation8 + $0x16c] ss:$16 sps:$4 sm:$0xff]  }
 0x159   :  { %v457_v38 = vmax.f32 %v452_v36, 0.0  ;;  %v2687_v36 = vld [vmem:[#allocation8 + $0x180] ss:$16 sps:$4 sm:$0xff]  }
 0x15b   :  { %v458_v43 = vpack.c.bf16 %v457_v38, %v457_v38  ;;  %v2695_v38 = vld [vmem:[#allocation8 + $0x1a4] ss:$16 sps:$4 sm:$0xff]  }
 0x15d   :  { %706 = vmatmul.mubr.bf16.vlgmr.msra.gmra.mrb[4].mxu0 %v458_v43  ;;  %747 = vmatmul.mubr.bf16.vlgmr.msra.gmra.mrb[4].mxu1 %v458_v43  ;;  %v2704_v43 = vld [vmem:[#allocation8 + $0x1cc] ss:$16 sps:$4 sm:$0xff]  }
 0x15e   :  { %2409 = vmatpush3.bf16.msra.mxu0 %v2633_v39  ;;  %2431 = vmatpush3.bf16.msra.mxu1 %v2634_v40  ;;  %v2698_v39 = vld [vmem:[#allocation8 + $0x1ac] ss:$16 sps:$4 sm:$0xff]   ;;  %v2693_v40 = vld [vmem:[#allocation8 + $0x1a0] ss:$16 sps:$4 sm:$0xff]  }
 0x15f   :  { %2410 = vmatprep.subr.bf16.mxu0 %v2635_v44  ;;  %2432 = vmatprep.subr.bf16.mxu1 %v2636_v45  ;;  %v2699_v44 = vld [vmem:[#allocation8 + $0x1c0] ss:$16 sps:$4 sm:$0xff]   ;;  %v2702_v45 = vld [vmem:[#allocation8 + $0x1c8] ss:$16 sps:$4 sm:$0xff]  }
 0x160   :  { %1159 = vmatprep.mubr.bf16.mxu0 %v859_v46  ;;  %1199 = vmatprep.mubr.bf16.mxu1 %v861_v47  ;;  %v2707_v46 = vld [vmem:[#allocation8 + $0x1e4] ss:$16 sps:$4 sm:$0xff]   ;;  %v2710_v47 = vld [vmem:[#allocation8 + $0x1ec] ss:$16 sps:$4 sm:$0xff]  }
 0x162   :  { %2411 = vmatpush3.bf16.msra.mxu0 %v2637_v48  ;;  %2433 = vmatpush3.bf16.msra.mxu1 %v2638_v49  ;;  %v2705_v48 = vld [vmem:[#allocation8 + $0x1e0] ss:$16 sps:$4 sm:$0xff]   ;;  %v2708_v49 = vld [vmem:[#allocation8 + $0x1e8] ss:$16 sps:$4 sm:$0xff]  }
 0x163   :  { %2412 = vmatprep.subr.bf16.mxu0 %v2639_v51  ;;  %2434 = vmatprep.subr.bf16.mxu1 %v2640_v52 }
 0x166   :  { %2413 = vmatpush3.bf16.msra.mxu0 %v2641_v53  ;;  %2435 = vmatpush3.bf16.msra.mxu1 %v2642_v54 }
 0x167   :  { %2414 = vmatprep.subr.bf16.mxu0 %v2643_v55  ;;  %2436 = vmatprep.subr.bf16.mxu1 %v2644_v56 }
 0x16a   :  { %2415 = vmatpush3.bf16.msra.mxu0 %v2645_v57  ;;  %2437 = vmatpush3.bf16.msra.mxu1 %v2646_v58 }
 0x16b   :  { %2416 = vmatprep.subr.bf16.mxu0 %v2647_v59  ;;  %2438 = vmatprep.subr.bf16.mxu1 %v2648_v60  ;;  %v2233_v60 = vld [vmem:[%s3133_s3 + $0x1] ss:$0 sm:$0xff] }
 0x16e   :  { %2417 = vmatpush3.bf16.msra.mxu0 %v2649_v61  ;;  %2439 = vmatpush3.bf16.msra.mxu1 %v2650_v62 }
 0x16f   :  { %2418 = vmatprep.subr.bf16.mxu0 %v2651_v63  ;;  %2440 = vmatprep.subr.bf16.mxu1 %v2652_v0 }
 0x172   :  { %2419 = vmatpush3.bf16.msra.mxu0 %v2653_v2  ;;  %2441 = vmatpush3.bf16.msra.mxu1 %v2654_v3 }
 0x173   :  { %2420 = vmatprep.subr.bf16.mxu0 %v2655_v4  ;;  %2442 = vmatprep.subr.bf16.mxu1 %v2656_v5 }
 0x176   :  { %2421 = vmatpush3.bf16.msra.mxu0 %v2657_v7  ;;  %2443 = vmatpush3.bf16.msra.mxu1 %v2658_v8 }
 0x177   :  { %2422 = vmatprep.subr.bf16.mxu0 %v2659_v10  ;;  %2444 = vmatprep.subr.bf16.mxu1 %v2660_v11  ;;  %v2712_v10 = vld [vmem:[#allocation10 + $0x1c0] sm:$0xff]  }
 0x178   :  { %v2713_v11 = vld [vmem:[#allocation10 + $0x100] sm:$0xff]  }
 0x17a   :  { %2423 = vmatpush3.bf16.msra.mxu0 %v2661_v13  ;;  %2445 = vmatpush3.bf16.msra.mxu1 %v2662_v14  ;;  %v2715_v13 = vld [vmem:[#allocation10 + $0x148] sm:$0xff]  }
 0x17b   :  { %1425 = vmatprep.subr.bf16.mxu0 %v2665_v18  ;;  %1466 = vmatprep.subr.bf16.mxu1 %v2668_v20  ;;  %v2716_v14 = vld [vmem:[#allocation10 + $0x1c8] sm:$0xff]   ;;  %v2720_v18 = vld [vmem:[#allocation10 + $0x1d0] sm:$0xff]  }
 0x17c   :  { %v2721_v20 = vld [vmem:[#allocation10 + $0x110] sm:$0xff]  }
 0x17d   :  { %1160 = vmatmul.mubr.bf16.vlgmr.msra.gmra.mrb[8].mxu0 %v858_v16  ;;  %1200 = vmatmul.mubr.bf16.vlgmr.msra.gmra.mrb[8].mxu1 %v860_v17  ;;  %v2718_v16 = vld [vmem:[#allocation10 + $0x188] sm:$0xff]   ;;  %v2719_v17 = vld [vmem:[#allocation10 + $0x150] sm:$0xff]  }
 0x17e   :  { %1457 = vmatprep.mubr.bf16.mxu0 %v2960_v19  ;;  %1498 = vmatprep.mubr.bf16.mxu1 %v2960_v19  ;;  %v2678_v19 = vld [vmem:[#allocation8 + $0x148] ss:$16 sps:$4 sm:$0xff]  }
 0x17f   :  { %1426 = vmatpush1.bf16.msra.mxu0 %v2663_v21  ;;  %1467 = vmatpush1.bf16.msra.mxu1 %v2666_v22  ;;  %v2722_v21 = vld [vmem:[#allocation10 + $0x190] sm:$0xff]   ;;  %v2723_v22 = vld [vmem:[#allocation10 + $0x158] sm:$0xff]  }
 0x180   :  { %1427 = vmatprep.subr.bf16.mxu0 %v2671_v23  ;;  %1468 = vmatprep.subr.bf16.mxu1 %v2674_v24  ;;  %v2724_v23 = vld [vmem:[#allocation10 + $0x1d8] sm:$0xff]  }
 0x181   :  { %v2725_v24 = vld [vmem:[#allocation10 + $0x118] sm:$0xff]  }
 0x183   :  { %1428 = vmatpush1.bf16.msra.mxu0 %v2669_v25  ;;  %1469 = vmatpush1.bf16.msra.mxu1 %v2672_v26  ;;  %v2726_v25 = vld [vmem:[#allocation10 + $0x198] sm:$0xff]   ;;  %v2727_v26 = vld [vmem:[#allocation10 + $0x160] sm:$0xff]  }
 0x184   :  { %1429 = vmatprep.subr.bf16.mxu0 %v2677_v27  ;;  %1470 = vmatprep.subr.bf16.mxu1 %v2680_v28  ;;  %v2728_v27 = vld [vmem:[#allocation10 + $0x1e0] sm:$0xff]  }
 0x185   :  { %v2729_v28 = vld [vmem:[#allocation10 + $0x120] sm:$0xff]  }
 0x187   :  { %1430 = vmatpush1.bf16.msra.mxu0 %v2675_v29  ;;  %1471 = vmatpush1.bf16.msra.mxu1 %v2678_v19  ;;  %v2730_v29 = vld [vmem:[#allocation10 + $0x1a0] sm:$0xff]   ;;  %v2731_v19 = vld [vmem:[#allocation10 + $0x168] sm:$0xff]  }
 0x188   :  { %1431 = vmatprep.subr.bf16.mxu0 %v2683_v31  ;;  %1472 = vmatprep.subr.bf16.mxu1 %v2686_v33  ;;  %v2733_v31 = vld [vmem:[#allocation10 + $0x128] sm:$0xff]   ;;  %v2735_v33 = vld [vmem:[#allocation10 + $0x170] sm:$0xff]  }
 0x18b   :  { %1432 = vmatpush1.bf16.msra.mxu0 %v2681_v30  ;;  %1473 = vmatpush1.bf16.msra.mxu1 %v2684_v32  ;;  %v2732_v30 = vld [vmem:[#allocation10 + $0x1e8] sm:$0xff]  }
 0x18c   :  { %1433 = vmatprep.subr.bf16.mxu0 %v2689_v34  ;;  %1474 = vmatprep.subr.bf16.mxu1 %v2692_v35  ;;  %v2734_v32 = vld [vmem:[#allocation10 + $0x1a8] sm:$0xff]   ;;  %v2736_v34 = vld [vmem:[#allocation10 + $0x1f0] sm:$0xff]  }
 0x18d   :  { %v2737_v35 = vld [vmem:[#allocation10 + $0x130] sm:$0xff]  }
 0x18f   :  { %1434 = vmatpush1.bf16.msra.mxu0 %v2687_v36  ;;  %1475 = vmatpush1.bf16.msra.mxu1 %v2690_v37  ;;  %v2738_v36 = vld [vmem:[#allocation10 + $0x1b0] sm:$0xff]   ;;  %v2739_v37 = vld [vmem:[#allocation10 + $0x178] sm:$0xff]  }
 0x190   :  { %1435 = vmatprep.subr.bf16.mxu0 %v2695_v38  ;;  %1476 = vmatprep.subr.bf16.mxu1 %v2698_v39  ;;  %v2740_v38 = vld [vmem:[#allocation10 + $0x1f8] sm:$0xff]  }
 0x191   :  { %v2741_v39 = vld [vmem:[#allocation10 + $0x138] sm:$0xff]  }
 0x193   :  { %1436 = vmatpush1.bf16.msra.mxu0 %v2693_v40  ;;  %1477 = vmatpush1.bf16.msra.mxu1 %v2696_v41  ;;  %v2742_v40 = vld [vmem:[#allocation10 + $0x1b8] sm:$0xff]   ;;  %v2743_v41 = vld [vmem:[#allocation10 + $0x40] sm:$0xff]  }
 0x194   :  { %1437 = vmatprep.subr.bf16.mxu0 %v2701_v42  ;;  %1478 = vmatprep.subr.bf16.mxu1 %v2704_v43  ;;  %v2744_v42 = vld [vmem:[#allocation10 + $0xc0] sm:$0xff]   ;;  %v493_v43 = vlaneseq }
 0x197   :  { %1438 = vmatpush1.bf16.msra.mxu0 %v2699_v44  ;;  %1479 = vmatpush1.bf16.msra.mxu1 %v2702_v45  ;;  %v494_v44 = vshrl.u32 %v493_v43, 7 }
 0x198   :  { %1439 = vmatprep.subr.bf16.mxu0 %v2707_v46  ;;  %1480 = vmatprep.subr.bf16.mxu1 %v2710_v47  ;;  %v491_v46 = vld [vmem:[%s3135_s5] sm:$0xf] }
 0x199   :  { %v499_v45 = vsub.s32 1, %v494_v44 }
 0x19b   :  { %1440 = vmatpush1.bf16.msra.mxu0 %v2705_v48  ;;  %1481 = vmatpush1.bf16.msra.mxu1 %v2708_v49  ;;  %v500_v47 = vrot.slane %v491_v46, %v499_v45  ;;  %v507_v48 = vsub.s32 3, %v494_v44 }
 0x19c   :  { %2452 = vmatprep.subr.bf16.mxu0 %v2711_v9  ;;  %2474 = vmatprep.subr.bf16.mxu1 %v2712_v10 }
 0x230   :  { %v3094_v50 = vpop.f32.mrb[4].mxu0  ;;  %v3096_v51 = vpop.f32.mrb[4].mxu1 }
 0x231   :  { %v3098_v52 = vpop.f32.mrb[5].mxu0  ;;  %v3100_v53 = vpop.f32.mrb[5].mxu1 }
 0x232   :  { %v711_v54 = vpop.f32.mrb[6].mxu0  ;;  %v752_v55 = vpop.f32.mrb[6].mxu1  ;;  %v710_v49 = vadd.f32 %v3098_v52, %v500_v47 }
 0x233   :  { %v712_v56 = vpop.f32.mrb[7].mxu0  ;;  %v753_v57 = vpop.f32.mrb[7].mxu1  ;;  %v508_v54 = vrot.slane %v491_v46, %v507_v48 }
 0x234   :  { %v756_v55 = vsub.f32 0.0, %v710_v49  ;;  %v2266_v57 = vld [vmem:[%s3135_s5 + $0x4] sm:$0xf] }
 0x235   :  { %v751_v56 = vadd.f32 %v3100_v53, %v508_v54 }
 0x250   :  { %v2424_v58 = vpop.f32.mrb[8].mxu0  ;;  %v2446_v59 = vpop.f32.mrb[8].mxu1 }
 0x251   :  { %v2425_v61 = vpop.f32.mrb[9].mxu0  ;;  %v2447_v62 = vpop.f32.mrb[9].mxu1 }
 0x252   :  { %v2426_v63 = vadd.f32 %v2425_v61, %v2424_v58  ;;  %v2448_v0 = vadd.f32 %v2447_v62, %v2446_v59  ;;  %v2427_v1 = vpop.f32.mrb[10].mxu0  ;;  %v2449_v2 = vpop.f32.mrb[10].mxu1  ;;  %v495_v58 = vsub.s32 0, %v494_v44  ;;  %v503_v59 = vsub.s32 2, %v494_v44 }
 0x253   :  { %v2428_v3 = vpop.f32.mrb[11].mxu0  ;;  %v2450_v4 = vpop.f32.mrb[11].mxu1  ;;  %v761_v62 = vmul.f32 1.442695, %v756_v55  ;;  %v1260_v1 = vrot.slane %v2266_v57, %v507_v48  ;;  %v2746_v55 = vld [vmem:[#allocation10 + $0x80] sm:$0xff]  }
 0x254   :  { %v1162_v5 = vadd.f32 %v2426_v63, %v2233_v60  ;;  %v1248_v60 = vrot.slane %v2266_v57, %v495_v58  ;;  %v1256_v61 = vrot.slane %v2266_v57, %v503_v59  ;;  %v758_v63 = vsub.f32 0.0, %v751_v56  ;;  %v2747_v56 = vld [vmem:[#allocation10 + $0x48] sm:$0xff]  }
 0x255   :  { %2779 = vpow2.f32 %v761_v62  ;;  %v2752_v62 = vld [vmem:[#allocation10 + $0xd0] sm:$0xff]  }
 0x256   :  { %v1202_v6 = vadd.f32 %v2448_v0, %v1162_v5  ;;  %v1252_v0 = vrot.slane %v2266_v57, %v499_v45  ;;  %v765_v53 = vmul.f32 1.442695, %v758_v63  ;;  %v2748_v57 = vld [vmem:[#allocation10 + $0xc8] sm:$0xff]   ;;  %v2753_v63 = vld [vmem:[#allocation10 + $0x10] sm:$0xff]  }
 0x258   :  { %v1207_v7 = vmax.f32 %v1202_v6, 0.0  ;;  %2781 = vpow2.f32 %v765_v53  ;;  %v2760_v53 = vld [vmem:[#allocation10 + $0xe0] sm:$0xff]  }
 0x25a   :  { %v1208_v8 = vpack.c.bf16 %v1207_v7, %v1207_v7 }
 0x25c   :  { %1458 = vmatmul.mubr.bf16.vlgmr.msra.gmra.mrb[12].mxu0 %v1208_v8  ;;  %1499 = vmatmul.mubr.bf16.vlgmr.msra.gmra.mrb[12].mxu1 %v1208_v8 }
 0x25d   :  { %2453 = vmatpush3.bf16.msra.mxu0 %v2713_v11  ;;  %2475 = vmatpush3.bf16.msra.mxu1 %v2714_v12 }
 0x25e   :  { %2454 = vmatprep.subr.bf16.mxu0 %v2715_v13  ;;  %2476 = vmatprep.subr.bf16.mxu1 %v2716_v14 }
 0x261   :  { %2455 = vmatpush3.bf16.msra.mxu0 %v2717_v15  ;;  %2477 = vmatpush3.bf16.msra.mxu1 %v2718_v16 }
 0x262   :  { %2456 = vmatprep.subr.bf16.mxu0 %v2719_v17  ;;  %2478 = vmatprep.subr.bf16.mxu1 %v2720_v18 }
 0x265   :  { %2457 = vmatpush3.bf16.msra.mxu0 %v2721_v20  ;;  %2479 = vmatpush3.bf16.msra.mxu1 %v2722_v21 }
 0x266   :  { %2458 = vmatprep.subr.bf16.mxu0 %v2723_v22  ;;  %2480 = vmatprep.subr.bf16.mxu1 %v2724_v23  ;;  %v2780_v22 = vpop.eup %2779 }
 0x267   :  { %v768_v23 = vadd.f32 1.0, %v2780_v22  ;;  %v2773_v22 = vld [vmem:[#allocation10 + $0x38] sm:$0xff]  }
 0x269   :  { %2459 = vmatpush3.bf16.msra.mxu0 %v2725_v24  ;;  %2481 = vmatpush3.bf16.msra.mxu1 %v2726_v25  ;;  %v2782_v24 = vpop.eup %2781 }
 0x26a   :  { %2460 = vmatprep.subr.bf16.mxu0 %v2727_v26  ;;  %2482 = vmatprep.subr.bf16.mxu1 %v2728_v27 }
 0x26d   :  { %2461 = vmatpush3.bf16.msra.mxu0 %v2729_v28  ;;  %2483 = vmatpush3.bf16.msra.mxu1 %v2730_v29 }
 0x26e   :  { %2462 = vmatprep.subr.bf16.mxu0 %v2731_v19  ;;  %2484 = vmatprep.subr.bf16.mxu1 %v2732_v30  ;;  %v496_v30 = vrot.slane %v491_v46, %v495_v58 }
 0x271   :  { %2463 = vmatpush3.bf16.msra.mxu0 %v2733_v31  ;;  %2485 = vmatpush3.bf16.msra.mxu1 %v2734_v32  ;;  %v770_v31 = vadd.f32 1.0, %v2782_v24 }
 0x272   :  { %2464 = vmatprep.subr.bf16.mxu0 %v2735_v33  ;;  %2486 = vmatprep.subr.bf16.mxu1 %v2736_v34  ;;  %v504_v33 = vrot.slane %v491_v46, %v503_v59  ;;  %v2745_v46 = vld [vmem:[#allocation10] sm:$0xff]   ;;  %v2749_v59 = vld [vmem:[#allocation10 + $0x8] sm:$0xff]  }
 0x275   :  { %2465 = vmatpush3.bf16.msra.mxu0 %v2737_v35  ;;  %2487 = vmatpush3.bf16.msra.mxu1 %v2738_v36  ;;  %v708_v35 = vadd.f32 %v3094_v50, %v496_v30  ;;  %v749_v36 = vadd.f32 %v3096_v51, %v504_v33 }
 0x276   :  { %2466 = vmatprep.subr.bf16.mxu0 %v2739_v37  ;;  %2488 = vmatprep.subr.bf16.mxu1 %v2740_v38 }
 0x277   :  { %v755_v37 = vsub.f32 0.0, %v708_v35 }
 0x279   :  { %2467 = vmatpush3.bf16.msra.mxu0 %v2741_v39  ;;  %2489 = vmatpush3.bf16.msra.mxu1 %v2742_v40  ;;  %v757_v39 = vsub.f32 0.0, %v749_v36  ;;  %v759_v43 = vmul.f32 1.442695, %v755_v37 }
 0x27a   :  { %2496 = vmatprep.subr.bf16.mxu0 %v2743_v41  ;;  %2518 = vmatprep.subr.bf16.mxu1 %v2744_v42 }
 0x27b   :  { %v763_v45 = vmul.f32 1.442695, %v757_v39 }
 0x32f   :  { %v1459_v2 = vpop.f32.mrb[12].mxu0  ;;  %v1500_v3 = vpop.f32.mrb[12].mxu1 }
 0x330   :  { %v1460_v4 = vadd.f32 %v1459_v2, %v1248_v60  ;;  %v1501_v52 = vadd.f32 %v1500_v3, %v1256_v61  ;;  %v1461_v5 = vpop.f32.mrb[13].mxu0  ;;  %v1502_v6 = vpop.f32.mrb[13].mxu1  ;;  %v2750_v60 = vld [vmem:[#allocation10 + $0x88] sm:$0xff]   ;;  %v2751_v61 = vld [vmem:[#allocation10 + $0x50] sm:$0xff]   ;;  %v2756_v2 = vld [vmem:[#allocation10 + $0xd8] sm:$0xff]  }
 0x331   :  { %v1462_v7 = vadd.f32 %v1461_v5, %v1252_v0  ;;  %v1503_v8 = vadd.f32 %v1502_v6, %v1260_v1  ;;  %v1463_v9 = vpop.f32.mrb[14].mxu0  ;;  %v1504_v10 = vpop.f32.mrb[14].mxu1  ;;  %v2754_v0 = vld [vmem:[#allocation10 + $0x90] sm:$0xff]   ;;  %v2755_v1 = vld [vmem:[#allocation10 + $0x58] sm:$0xff]   ;;  %v2759_v5 = vld [vmem:[#allocation10 + $0x60] sm:$0xff]  }
 0x332   :  { %v1507_v11 = vsub.f32 0.0, %v1460_v4  ;;  %v1509_v12 = vsub.f32 0.0, %v1501_v52  ;;  %v1464_v13 = vpop.f32.mrb[15].mxu0  ;;  %v1505_v14 = vpop.f32.mrb[15].mxu1  ;;  %v2757_v3 = vld [vmem:[#allocation10 + $0x18] sm:$0xff]   ;;  %v2762_v10 = vld [vmem:[#allocation10 + $0xa0] sm:$0xff]  }
 0x333   :  { %v1508_v15 = vsub.f32 0.0, %v1462_v7  ;;  %v1510_v16 = vsub.f32 0.0, %v1503_v8  ;;  %v2758_v52 = vld [vmem:[#allocation10 + $0x98] sm:$0xff]   ;;  %v2761_v8 = vld [vmem:[#allocation10 + $0x20] sm:$0xff]   ;;  %v2765_v13 = vld [vmem:[#allocation10 + $0x28] sm:$0xff]  }
 0x334   :  { %v1511_v17 = vmul.f32 1.442695, %v1507_v11  ;;  %v1515_v18 = vmul.f32 1.442695, %v1509_v12  ;;  %v2763_v11 = vld [vmem:[#allocation10 + $0x68] sm:$0xff]  }
 0x335   :  { %v1513_v20 = vmul.f32 1.442695, %v1508_v15  ;;  %v1517_v21 = vmul.f32 1.442695, %v1510_v16  ;;  %v2764_v12 = vld [vmem:[#allocation10 + $0xe8] sm:$0xff]   ;;  %v2767_v15 = vld [vmem:[#allocation10 + $0x70] sm:$0xff]  }
 0x336   :  { %2783 = vpow2.f32 %v1511_v17  ;;  %v2766_v14 = vld [vmem:[#allocation10 + $0xa8] sm:$0xff]   ;;  %v2768_v16 = vld [vmem:[#allocation10 + $0xf0] sm:$0xff]  }
 0x337   :  { %2785 = vpow2.f32 %v1515_v18  ;;  %v2769_v17 = vld [vmem:[#allocation10 + $0x30] sm:$0xff]  }
 0x338   :  { %2787 = vpow2.f32 %v1513_v20  ;;  %v2770_v18 = vld [vmem:[#allocation10 + $0xb0] sm:$0xff]   ;;  %v2771_v20 = vld [vmem:[#allocation10 + $0x78] sm:$0xff]  }
 0x339   :  { %2789 = vpow2.f32 %v1517_v21  ;;  %v2772_v21 = vld [vmem:[#allocation10 + $0xf8] sm:$0xff]  }
 0x33a   :  { %2791 = vrcp.f32 %v768_v23  ;;  %v2774_v23 = vld [vmem:[#allocation10 + $0xb8] sm:$0xff]  }
 0x340   :  { %v2784_v25 = vpop.eup %2783 }
 0x341   :  { %v2786_v26 = vpop.eup %2785  ;;  %v1519_v27 = vadd.f32 1.0, %v2784_v25 }
 0x342   :  { %v2788_v28 = vpop.eup %2787  ;;  %v1521_v29 = vadd.f32 1.0, %v2786_v26 }
 0x343   :  { %v2790_v19 = vpop.eup %2789  ;;  %2793 = vrcp.f32 %v1519_v27  ;;  %v1520_v32 = vadd.f32 1.0, %v2788_v28 }
 0x344   :  { %2795 = vrcp.f32 %v1521_v29  ;;  %v1522_v34 = vadd.f32 1.0, %v2790_v19  ;;  %v2792_v38 = vpop.eup %2791 }
 0x345   :  { %2797 = vrcp.f32 %v1520_v32  ;;  %v776_v51 = vpack.c.bf16 %v2792_v38, %v2792_v38 }
 0x346   :  { %2799 = vrcp.f32 %v1522_v34 }
 0x347   :  { %2801 = vrcp.f32 %v770_v31 }
 0x348   :  { %2803 = vpow2.f32 %v759_v43 }
 0x349   :  { %2805 = vpow2.f32 %v763_v45 }
 0x34d   :  { %v2794_v40 = vpop.eup %2793 }
 0x34e   :  { %v2796_v41 = vpop.eup %2795  ;;  %v1527_v54 = vpack.c.bf16 %v2794_v40, %v2794_v40 }
 0x34f   :  { %v2798_v42 = vpop.eup %2797  ;;  %v1529_v50 = vpack.c.bf16 %v2796_v41, %v2796_v41 }
 0x350   :  { %v2800_v44 = vpop.eup %2799  ;;  %v1528_v47 = vpack.c.bf16 %v2798_v42, %v2798_v42 }
 0x351   :  { %v2802_v48 = vpop.eup %2801  ;;  %v1530_v49 = vpack.c.bf16 %v2800_v44, %v2800_v44 }
 0x352   :  { %1820 = vmatprep.mubr.bf16.mxu0 %v1528_v47  ;;  %v778_v58 = vpack.c.bf16 %v2802_v48, %v2802_v48  ;;  %v2804_v4 = vpop.eup %2803 }
 0x353   :  { %1860 = vmatprep.mubr.bf16.mxu1 %v1530_v49  ;;  %1821 = vmatmul.mubr.bf16.vlgmr.msra.gmra.mrb[16].mxu0 %v1527_v54  ;;  %v2806_v6 = vpop.eup %2805  ;;  %v767_v7 = vadd.f32 1.0, %v2804_v4  ;;  %v2363_v49 = vld [vmem:[%s3137_s7] ss:$0 sm:$0xff] }
 0x354   :  { %1861 = vmatmul.mubr.bf16.vlgmr.msra.gmra.mrb[16].mxu1 %v1529_v50  ;;  %2497 = vmatpush3.bf16.msra.mxu0 %v2745_v46  ;;  %v769_v9 = vadd.f32 1.0, %v2806_v6 }
 0x355   :  { %2519 = vmatpush3.bf16.msra.mxu1 %v2746_v55  ;;  %2092 = vmatprep.mubr.bf16.mxu0 %v776_v51  ;;  %2807 = vrcp.f32 %v767_v7 }
 0x356   :  { %2132 = vmatprep.mubr.bf16.mxu1 %v778_v58  ;;  %2498 = vmatprep.subr.bf16.mxu0 %v2747_v56  ;;  %2809 = vrcp.f32 %v769_v9 }
 0x357   :  { %2520 = vmatprep.subr.bf16.mxu1 %v2748_v57 }
 0x358   :  { %2499 = vmatpush3.bf16.msra.mxu0 %v2749_v59 }
 0x359   :  { %2521 = vmatpush3.bf16.msra.mxu1 %v2750_v60  ;;  %2500 = vmatprep.subr.bf16.mxu0 %v2751_v61 }
 0x35a   :  { %2522 = vmatprep.subr.bf16.mxu1 %v2752_v62 }
 0x35c   :  { %2501 = vmatpush3.bf16.msra.mxu0 %v2753_v63 }
 0x35d   :  { %2523 = vmatpush3.bf16.msra.mxu1 %v2754_v0  ;;  %2502 = vmatprep.subr.bf16.mxu0 %v2755_v1 }
 0x35e   :  { %2524 = vmatprep.subr.bf16.mxu1 %v2756_v2 }
 0x35f   :  { %v2808_v24 = vpop.eup %2807 }
 0x360   :  { %2503 = vmatpush3.bf16.msra.mxu0 %v2757_v3  ;;  %v2810_v25 = vpop.eup %2809  ;;  %v775_v26 = vpack.c.bf16 %v2808_v24, %v2808_v24 }
 0x361   :  { %2525 = vmatpush3.bf16.msra.mxu1 %v2758_v52  ;;  %2504 = vmatprep.subr.bf16.mxu0 %v2759_v5  ;;  %v777_v27 = vpack.c.bf16 %v2810_v25, %v2810_v25 }
 0x362   :  { %2526 = vmatprep.subr.bf16.mxu1 %v2760_v53 }
 0x364   :  { %2505 = vmatpush3.bf16.msra.mxu0 %v2761_v8 }
 0x365   :  { %2527 = vmatpush3.bf16.msra.mxu1 %v2762_v10  ;;  %2506 = vmatprep.subr.bf16.mxu0 %v2763_v11 }
 0x366   :  { %2528 = vmatprep.subr.bf16.mxu1 %v2764_v12 }
 0x368   :  { %2507 = vmatpush3.bf16.msra.mxu0 %v2765_v13 }
 0x369   :  { %2529 = vmatpush3.bf16.msra.mxu1 %v2766_v14  ;;  %2508 = vmatprep.subr.bf16.mxu0 %v2767_v15 }
 0x36a   :  { %2530 = vmatprep.subr.bf16.mxu1 %v2768_v16 }
 0x36c   :  { %2509 = vmatpush3.bf16.msra.mxu0 %v2769_v17 }
 0x36d   :  { %2531 = vmatpush3.bf16.msra.mxu1 %v2770_v18  ;;  %2510 = vmatprep.subr.bf16.mxu0 %v2771_v20 }
 0x36e   :  { %2532 = vmatprep.subr.bf16.mxu1 %v2772_v21 }
 0x370   :  { %2511 = vmatpush3.bf16.msra.mxu0 %v2773_v22 }
 0x371   :  { %2533 = vmatpush3.bf16.msra.mxu1 %v2774_v23 }
 0x373   :  { %2093 = vmatmul.mubr.bf16.vlgmr.msra.gmra.mrb[20].mxu0 %v775_v26 }
 0x374   :  { %2133 = vmatmul.mubr.bf16.vlgmr.msra.gmra.mrb[20].mxu1 %v777_v27 }
 0x426   :  { %v2468_v28 = vpop.f32.mrb[16].mxu0 }
 0x427   :  { %v2490_v29 = vpop.f32.mrb[16].mxu1  ;;  %v2469_v19 = vpop.f32.mrb[17].mxu0 }
 0x428   :  { %v2470_v30 = vadd.f32 %v2469_v19, %v2468_v28  ;;  %v2491_v31 = vpop.f32.mrb[17].mxu1  ;;  %v2471_v32 = vpop.f32.mrb[18].mxu0 }
 0x429   :  { %v2492_v33 = vadd.f32 %v2491_v31, %v2490_v29  ;;  %v2493_v34 = vpop.f32.mrb[18].mxu1  ;;  %v2472_v35 = vpop.f32.mrb[19].mxu0 }
 0x42a   :  { %v2494_v36 = vpop.f32.mrb[19].mxu1 }
 0x42b   :  { %v1863_v37 = vadd.f32 %v2492_v33, %v2470_v30 }
 0x446   :  { %v2512_v38 = vpop.f32.mrb[20].mxu0 }
 0x447   :  { %v2534_v39 = vpop.f32.mrb[20].mxu1  ;;  %v2513_v40 = vpop.f32.mrb[21].mxu0 }
 0x448   :  { %v2514_v41 = vadd.f32 %v2513_v40, %v2512_v38  ;;  %v2535_v42 = vpop.f32.mrb[21].mxu1  ;;  %v2515_v43 = vpop.f32.mrb[22].mxu0 }
 0x449   :  { %v2536_v44 = vadd.f32 %v2535_v42, %v2534_v39  ;;  %v2537_v45 = vpop.f32.mrb[22].mxu1  ;;  %v2516_v47 = vpop.f32.mrb[23].mxu0 }
 0x44a   :  { %v2095_v46 = vadd.f32 %v2514_v41, %v1863_v37  ;;  %v2538_v48 = vpop.f32.mrb[23].mxu1 }
 0x44c   :  { %v2135_v54 = vadd.f32 %v2536_v44, %v2095_v46 }
 0x44e   :  { %v2147_v55 = vadd.f32 %v2363_v49, %v2135_v54 }
 0x450   :  { %v2148_v50 = vmax.f32 %v2147_v55, 0.0 }
 0x452   :  { %2149 = vst [vmem:[#allocation11] sm:$0xff] %v2148_v50 }
 0x453   :  { %2932 = shalt.err (!%p2929_p2)
}
 0x454   :  { %s2933_s29 = scalar_lea.hbm %s3138_s8, 128 }
 0x455   :  { %p2934_p3 = scmp.ne.s32.totalorder %s3138_s8, %s2933_s29  ;;  %p2937_p4 = scmp.lt.u32.totalorder %s2933_s29, %s3138_s8 }
 0x457   :  { %p2939_p5 = pnand %p2937_p4, %p2934_p3 }
 0x459   :  { %2942 = shalt.err (!%p2939_p5)
}
 0x45a   :  { %2159 = dma.vmem_to_hbm [thread:$0]  %s2157_s1, 128, %s3138_s8, [#allocation4]  }
 0x45b   :  { %2949 = dma.done.wait [#allocation4], 128  }
 0x45c   :  { %2950 = vsyncadd [#allocation4], 4294967168 }
 0x45d   :  { %2163 = vsyncpa [#allocation3], 1 }
 0x45e   :  { %2164 = vsyncpa [#allocation6], 1 }
 0x45f   :  { %2165 = vsyncpa [#allocation9], 1 }
 0x460   :  { %2166 = vsyncpa [#allocation4], 1 }

</bundles_post_ra>
